<compile_context>
chip_gen: v6e
topology: v6e:2x2x1
jax: 0.10.0
libtpu: 0.0.40
codegen_flags: <defaults>
</compile_context>

<pallas_src>
import functools
import math

import jax
import jax.numpy as jnp
from jax.experimental import pallas as pl
from jax.experimental.pallas import tpu as pltpu

NUM_CORES = 2                  # leading "parallel" grid axis (2 TCs on v7x;
                               # harmless sequential split on v5e/v6e).
MATMUL_DTYPE = jnp.bfloat16    # MXU-native matmul inputs; math stays f32.


# ----------------------------- Pallas kernel --------------------------------
def _spectral_loss_kernel(xin_ref, xtg_ref, basis_ref, l1_ref, l2_ref, *,
                          f_pad, eps):
    """One tile of frames -> power spectrograms -> lane-parallel partial sums."""

    @pl.when(pl.program_id(1) == 0)
    def _init():
        l1_ref[...] = jnp.zeros_like(l1_ref)
        l2_ref[...] = jnp.zeros_like(l2_ref)

    xi = xin_ref[...]            # (TR, n_fft)       bf16 input frames
    xt = xtg_ref[...]            # (TR, n_fft)       bf16 target frames
    w = basis_ref[...]           # (n_fft, 2*f_pad)  bf16 [win*cos | win*sin]
    tr = xi.shape[0]

    # Windowed DFT: two wide MXU matmuls sharing the resident fused RHS.
    yi = jnp.dot(xi, w, preferred_element_type=jnp.float32)   # (TR, 2F) f32
    yt = jnp.dot(xt, w, preferred_element_type=jnp.float32)

    # Power spectrograms (power=2.0).  Lane slices are at multiples of 128.
    re_i = yi[:, :f_pad]
    im_i = yi[:, f_pad:]
    re_t = yt[:, :f_pad]
    im_t = yt[:, f_pad:]
    spec_i = re_i * re_i + im_i * im_i                         # (TR, F)
    spec_t = re_t * re_t + im_t * im_t

    # ---- L1 term: accumulate |spec_t - spec_i| lane-parallel.
    # Fold rows in groups of 8 with static tile-aligned slices: pure VALU adds,
    # no per-step XLU reduction and no narrow masked stores.
    d = jnp.abs(spec_t - spec_i)                               # (TR, F)
    acc = d[0:8, :]
    for g in range(1, tr // 8):
        acc = acc + d[8 * g:8 * (g + 1), :]
    l1_ref[...] += acc[None]                                   # (1, 8, F)

    # ---- L2 term: per-frame 2-norm over frequency of the log-spec diff.
    # One log + one exact reciprocal instead of two logs.  Padded freq bins and
    # padded (zero) rows have spec_t == spec_i, so they contribute exactly 0.
    ratio = (spec_t + eps) * pl.reciprocal(spec_i + eps, approx=False)
    ld = jnp.log(ratio)
    row_sq = jnp.sum(ld * ld, axis=1, keepdims=True)           # (TR, 1)
    l2_ref[...] += jnp.sqrt(row_sq)[None]                      # (1, TR, 1)


def _choose_tile_rows(rows, n_fft):
    """Large row tiles (multiple of 16 for bf16 sublane packing)."""
    max_tile = 256 if n_fft <= 1024 else 128
    per_core = pl.cdiv(rows, NUM_CORES)
    tr = min(max_tile, pl.cdiv(per_core, 16) * 16)
    return max(tr, 16)


def _single_scale_sums(framed_in, framed_tg, basis, f_pad, eps):
    """Returns (sum |spec_t - spec_i|, sum_frames ||log diff||_2) as scalars."""
    rows, n_fft = framed_in.shape

    tile_rows = _choose_tile_rows(rows, n_fft)
    steps = pl.cdiv(rows, NUM_CORES * tile_rows)
    rows_pad = NUM_CORES * steps * tile_rows
    pad = rows_pad - rows
    if pad:
        # Zero frames produce identical (zero) spectrograms for input and
        # target, hence contribute exactly 0 to both loss terms.
        framed_in = jnp.pad(framed_in, ((0, pad), (0, 0)))
        framed_tg = jnp.pad(framed_tg, ((0, pad), (0, 0)))

    kernel = functools.partial(_spectral_loss_kernel, f_pad=f_pad, eps=eps)

    l1_parts, l2_parts = pl.pallas_call(
        kernel,
        out_shape=(
            jax.ShapeDtypeStruct((NUM_CORES, 8, f_pad), jnp.float32),
            jax.ShapeDtypeStruct((NUM_CORES, tile_rows, 1), jnp.float32),
        ),
        grid_spec=pltpu.PrefetchScalarGridSpec(
            num_scalar_prefetch=0,
            grid=(NUM_CORES, steps),
            in_specs=[
                pl.BlockSpec((tile_rows, n_fft),
                             lambda c, i, _s=steps: (c * _s + i, 0)),
                pl.BlockSpec((tile_rows, n_fft),
                             lambda c, i, _s=steps: (c * _s + i, 0)),
                pl.BlockSpec((n_fft, 2 * f_pad), lambda c, i: (0, 0)),
            ],
            out_specs=(
                pl.BlockSpec((1, 8, f_pad), lambda c, i: (c, 0, 0)),
                pl.BlockSpec((1, tile_rows, 1), lambda c, i: (c, 0, 0)),
            ),
        ),
        compiler_params=pltpu.CompilerParams(
            dimension_semantics=("parallel", "arbitrary"),
            vmem_limit_bytes=48 * 1024 * 1024,
        ),
    )(framed_in, framed_tg, basis)

    # Final reduction of the small lane-parallel partials happens in XLA
    # (pairwise; avoids one long sequential scalar accumulation in-kernel).
    return jnp.sum(l1_parts), jnp.sum(l2_parts)


# ------------------------------- JAX glue ------------------------------------
def _hann_window(win_length):
    # torch.hann_window(win_length, periodic=True)
    n = jnp.arange(win_length, dtype=jnp.float32)
    return 0.5 - 0.5 * jnp.cos(2.0 * math.pi * n / win_length)


def _dft_basis(n_fft, win_length, f_pad):
    """Window-weighted onesided DFT basis, [cos | sin] fused along the lane
    axis; each half zero-padded from n_freq to f_pad columns."""
    n_freq = n_fft // 2 + 1
    win = _hann_window(win_length)
    left = (n_fft - win_length) // 2
    window = jnp.zeros((n_fft,), jnp.float32).at[left:left + win_length].set(win)

    n = jnp.arange(n_fft, dtype=jnp.float32)[:, None]
    f = jnp.arange(n_freq, dtype=jnp.float32)[None, :]
    ang = 2.0 * math.pi * n * f / n_fft
    cosb = jnp.cos(ang) * window[:, None]
    sinb = jnp.sin(ang) * window[:, None]   # sign irrelevant for |.|^2

    pad = f_pad - n_freq
    cosb = jnp.pad(cosb, ((0, 0), (0, pad)))
    sinb = jnp.pad(sinb, ((0, 0), (0, pad)))
    return jnp.concatenate([cosb, sinb], axis=1).astype(MATMUL_DTYPE)


def _frame(x, n_fft, hop_length):
    """x: (N, L) -> (N, num_frames, n_fft), center=True reflect padding."""
    pad = n_fft // 2
    xp = jnp.pad(x, ((0, 0), (pad, pad)), mode="reflect")
    num_frames = (xp.shape[-1] - n_fft) // hop_length + 1
    idx = (jnp.arange(num_frames)[:, None] * hop_length
           + jnp.arange(n_fft)[None, :])
    return xp[:, idx]


def multi_scale_spectral_loss(inp, tgt, n_fft,
                              win_length=None, hop_length=None, weights=None,
                              eps=1e-8):
    """JAX/Pallas equivalent of MultiScaleSpectralLoss.forward (transform=True)."""
    if win_length is None:
        win_length = [f for f in n_fft]
    if hop_length is None:
        hop_length = [w // 4 for w in win_length]
    if weights is None:
        weights = [math.sqrt(h / 2) for h in hop_length]

    # Flatten any leading (batch, channel) dims; spectrogram is per-1D-signal.
    # Cast to the matmul dtype *before* framing: the gather only produces /
    # the kernel only reads bf16, halving framed-intermediate HBM traffic.
    flat_in = inp.reshape(-1, inp.shape[-1]).astype(MATMUL_DTYPE)
    flat_tg = tgt.reshape(-1, tgt.shape[-1]).astype(MATMUL_DTYPE)

    loss = jnp.float32(0.0)
    for _n_fft, _win, _hop, _w in zip(n_fft, win_length, hop_length, weights):
        n_freq = _n_fft // 2 + 1
        f_pad = pl.cdiv(n_freq, 128) * 128
        basis = _dft_basis(_n_fft, _win, f_pad)

        # TODO(synk): framing is still XLA-side, so each sample is DMA'd
        # ~n_fft/hop (=4x) times; an in-kernel strided-framing variant reading
        # the raw padded signal would cut input HBM traffic accordingly.
        fr_in = _frame(flat_in, _n_fft, _hop)     # (N, T, n_fft) bf16
        fr_tg = _frame(flat_tg, _n_fft, _hop)
        N, T, _ = fr_in.shape
        rows = N * T

        l1_sum, l2_sum = _single_scale_sums(
            fr_in.reshape(rows, _n_fft), fr_tg.reshape(rows, _n_fft),
            basis, f_pad, eps)

        l1 = l1_sum / (rows * n_freq)       # mean over freq, frames, batch
        l2 = l2_sum / (rows * n_freq)       # (norm / n_freq) meaned over rows
        loss = loss + l1 + _w * l2
    return loss


# --------------------------------- main --------------------------------------
if __name__ == "__main__":
    key = jax.random.PRNGKey(0)
    k1, k2 = jax.random.split(key)

    batch, length = 2, 256
    x = jax.random.normal(k1, (batch, length), dtype=jnp.float32)
    y = jax.random.normal(k2, (batch, length), dtype=jnp.float32)

    n_fft = [64, 128]   # win_length = n_fft, hop = n_fft // 4, weight = sqrt(hop/2)

    @jax.jit
    def loss_fn(a, b):
        return multi_scale_spectral_loss(a, b, n_fft)

    loss = loss_fn(x, y)
    loss = jax.block_until_ready(loss)
    assert jnp.isfinite(loss), "loss is not finite"
    print("KERNEL_OK")
</pallas_src>

<mosaic_0001>
module attributes {stable_mosaic.version = 11 : i64} {
  func.func @_spectral_loss_kernel(%arg0: i32, %arg1: i32, %arg2: memref<32x64xbf16, #tpu.memory_space<vmem>>, %arg3: memref<32x64xbf16, #tpu.memory_space<vmem>>, %arg4: memref<64x256xbf16, #tpu.memory_space<vmem>>, %arg5: memref<1x8x128xf32, #tpu.memory_space<vmem>>, %arg6: memref<1x32x1xf32, #tpu.memory_space<vmem>>) attributes {dimension_semantics = [#tpu.dimension_semantics<parallel>, #tpu.dimension_semantics<arbitrary>], iteration_bounds = array<i64: 2, 1>, scalar_prefetch = 0 : i64, scratch_operands = 0 : i64, tpu.core_type = #tpu.core_type<tc>, window_params = [{transform_indices = @transform_0, window_bounds = array<i64: 32, 64>}, {transform_indices = @transform_1, window_bounds = array<i64: 32, 64>}, {pipeline_mode = #tpu.pipeline_mode<synchronous>, transform_indices = @transform_2, window_bounds = array<i64: 64, 256>}, {transform_indices = @transform_3, window_bounds = array<i64: 1, 8, 128>}, {transform_indices = @transform_4, window_bounds = array<i64: 1, 32, 1>}]} {
    %c0_i32 = arith.constant 0 : i32
    %0 = arith.cmpi eq, %arg1, %c0_i32 : i32
    %1 = arith.extui %0 : i1 to i32
    %c0_i32_0 = arith.constant 0 : i32
    %2 = arith.cmpi ne, %1, %c0_i32_0 : i32
    scf.if %2 {
      %cst_22 = arith.constant 0.000000e+00 : f32
      %46 = vector.broadcast %cst_22 : f32 to vector<1x8x128xf32>
      %c0_23 = arith.constant 0 : index
      %c0_24 = arith.constant 0 : index
      %c0_25 = arith.constant 0 : index
      %47 = vector.load %arg5[%c0_23, %c0_24, %c0_25] : memref<1x8x128xf32, #tpu.memory_space<vmem>>, vector<1x8x128xf32>
      tpu.vector_store %arg5[%c0_23, %c0_24, %c0_25], %46 {strides = array<i32>} : memref<1x8x128xf32, #tpu.memory_space<vmem>>, vector<1x8x128xf32>,
      %cst_26 = arith.constant 0.000000e+00 : f32
      %48 = vector.broadcast %cst_26 : f32 to vector<1x32x1xf32>
      %c0_27 = arith.constant 0 : index
      %c0_28 = arith.constant 0 : index
      %c0_29 = arith.constant 0 : index
      %49 = vector.load %arg6[%c0_27, %c0_28, %c0_29] : memref<1x32x1xf32, #tpu.memory_space<vmem>>, vector<1x32x1xf32>
      tpu.vector_store %arg6[%c0_27, %c0_28, %c0_29], %48 {strides = array<i32>} : memref<1x32x1xf32, #tpu.memory_space<vmem>>, vector<1x32x1xf32>,
    } else {
    }
    %c0 = arith.constant 0 : index
    %c0_1 = arith.constant 0 : index
    %3 = vector.load %arg2[%c0, %c0_1] : memref<32x64xbf16, #tpu.memory_space<vmem>>, vector<32x64xbf16>
    %c0_2 = arith.constant 0 : index
    %c0_3 = arith.constant 0 : index
    %4 = vector.load %arg3[%c0_2, %c0_3] : memref<32x64xbf16, #tpu.memory_space<vmem>>, vector<32x64xbf16>
    %c0_4 = arith.constant 0 : index
    %c0_5 = arith.constant 0 : index
    %5 = vector.load %arg4[%c0_4, %c0_5] : memref<64x256xbf16, #tpu.memory_space<vmem>>, vector<64x256xbf16>
    %cst = arith.constant dense<0.000000e+00> : vector<32x256xf32>
    %6 = tpu.matmul %3, %5, %cst {dimension_numbers = #tpu.dot_dimension_numbers<[1], [0], [0], [1], [0, 0, 1, 1], [], []>} : vector<32x64xbf16>, vector<64x256xbf16>, vector<32x256xf32> -> vector<32x256xf32>
    %cst_6 = arith.constant dense<0.000000e+00> : vector<32x256xf32>
    %7 = tpu.matmul %4, %5, %cst_6 {dimension_numbers = #tpu.dot_dimension_numbers<[1], [0], [0], [1], [0, 0, 1, 1], [], []>} : vector<32x64xbf16>, vector<64x256xbf16>, vector<32x256xf32> -> vector<32x256xf32>
    %8 = vector.extract_strided_slice %6 {offsets = [0, 0], sizes = [32, 128], strides = [1, 1]} : vector<32x256xf32> to vector<32x128xf32>
    %9 = vector.extract_strided_slice %6 {offsets = [0, 128], sizes = [32, 128], strides = [1, 1]} : vector<32x256xf32> to vector<32x128xf32>
    %10 = vector.extract_strided_slice %7 {offsets = [0, 0], sizes = [32, 128], strides = [1, 1]} : vector<32x256xf32> to vector<32x128xf32>
    %11 = vector.extract_strided_slice %7 {offsets = [0, 128], sizes = [32, 128], strides = [1, 1]} : vector<32x256xf32> to vector<32x128xf32>
    %12 = arith.mulf %8, %8 : vector<32x128xf32>
    %13 = arith.mulf %9, %9 : vector<32x128xf32>
    %14 = arith.addf %12, %13 : vector<32x128xf32>
    %15 = arith.mulf %10, %10 : vector<32x128xf32>
    %16 = arith.mulf %11, %11 : vector<32x128xf32>
    %17 = arith.addf %15, %16 : vector<32x128xf32>
    %18 = arith.subf %17, %14 : vector<32x128xf32>
    %19 = math.absf %18 : vector<32x128xf32>
    %20 = vector.extract_strided_slice %19 {offsets = [0, 0], sizes = [8, 128], strides = [1, 1]} : vector<32x128xf32> to vector<8x128xf32>
    %21 = vector.extract_strided_slice %19 {offsets = [8, 0], sizes = [8, 128], strides = [1, 1]} : vector<32x128xf32> to vector<8x128xf32>
    %22 = arith.addf %20, %21 : vector<8x128xf32>
    %23 = vector.extract_strided_slice %19 {offsets = [16, 0], sizes = [8, 128], strides = [1, 1]} : vector<32x128xf32> to vector<8x128xf32>
    %24 = arith.addf %22, %23 : vector<8x128xf32>
    %25 = vector.extract_strided_slice %19 {offsets = [24, 0], sizes = [8, 128], strides = [1, 1]} : vector<32x128xf32> to vector<8x128xf32>
    %26 = arith.addf %24, %25 : vector<8x128xf32>
    %c0_7 = arith.constant 0 : index
    %c0_8 = arith.constant 0 : index
    %c0_9 = arith.constant 0 : index
    %27 = vector.load %arg5[%c0_7, %c0_8, %c0_9] : memref<1x8x128xf32, #tpu.memory_space<vmem>>, vector<1x8x128xf32>
    %28 = vector.shape_cast %26 : vector<8x128xf32> to vector<1x8x128xf32>
    %29 = arith.addf %27, %28 : vector<1x8x128xf32>
    %c0_10 = arith.constant 0 : index
    %c0_11 = arith.constant 0 : index
    %c0_12 = arith.constant 0 : index
    %30 = vector.load %arg5[%c0_10, %c0_11, %c0_12] : memref<1x8x128xf32, #tpu.memory_space<vmem>>, vector<1x8x128xf32>
    tpu.vector_store %arg5[%c0_10, %c0_11, %c0_12], %29 {strides = array<i32>} : memref<1x8x128xf32, #tpu.memory_space<vmem>>, vector<1x8x128xf32>,
    %cst_13 = arith.constant 9.99999993E-9 : f32
    %31 = vector.broadcast %cst_13 : f32 to vector<32x128xf32>
    %32 = arith.addf %17, %31 : vector<32x128xf32>
    %cst_14 = arith.constant 9.99999993E-9 : f32
    %33 = vector.broadcast %cst_14 : f32 to vector<32x128xf32>
    %34 = arith.addf %14, %33 : vector<32x128xf32>
    %35 = tpu.reciprocal %34 : vector<32x128xf32> -> vector<32x128xf32>
    %36 = arith.mulf %32, %35 : vector<32x128xf32>
    %37 = math.log %36 : vector<32x128xf32>
    %38 = arith.mulf %37, %37 : vector<32x128xf32>
    %cst_15 = arith.constant dense<0.000000e+00> : vector<32xf32>
    %39 = vector.multi_reduction <add>, %38, %cst_15 [1] : vector<32x128xf32> to vector<32xf32>
    %40 = vector.shape_cast %39 : vector<32xf32> to vector<32x1xf32>
    %c0_16 = arith.constant 0 : index
    %c0_17 = arith.constant 0 : index
    %c0_18 = arith.constant 0 : index
    %41 = vector.load %arg6[%c0_16, %c0_17, %c0_18] : memref<1x32x1xf32, #tpu.memory_space<vmem>>, vector<1x32x1xf32>
    %42 = math.sqrt %40 : vector<32x1xf32>
    %43 = vector.shape_cast %42 : vector<32x1xf32> to vector<1x32x1xf32>
    %44 = arith.addf %41, %43 : vector<1x32x1xf32>
    %c0_19 = arith.constant 0 : index
    %c0_20 = arith.constant 0 : index
    %c0_21 = arith.constant 0 : index
    %45 = vector.load %arg6[%c0_19, %c0_20, %c0_21] : memref<1x32x1xf32, #tpu.memory_space<vmem>>, vector<1x32x1xf32>
    tpu.vector_store %arg6[%c0_19, %c0_20, %c0_21], %44 {strides = array<i32>} : memref<1x32x1xf32, #tpu.memory_space<vmem>>, vector<1x32x1xf32>,
    return
  }
  func.func @transform_0(%arg0: i32, %arg1: i32) -> (i32, i32) {
    %c1_i32 = arith.constant 1 : i32
    %0 = arith.muli %arg0, %c1_i32 : i32
    %1 = arith.addi %0, %arg1 : i32
    %c0_i32 = arith.constant 0 : i32
    %c0_i32_0 = arith.constant 0 : i32
    return %1, %c0_i32 : i32, i32
  }
  func.func @transform_1(%arg0: i32, %arg1: i32) -> (i32, i32) {
    %c1_i32 = arith.constant 1 : i32
    %0 = arith.muli %arg0, %c1_i32 : i32
    %1 = arith.addi %0, %arg1 : i32
    %c0_i32 = arith.constant 0 : i32
    %c0_i32_0 = arith.constant 0 : i32
    return %1, %c0_i32 : i32, i32
  }
  func.func @transform_2(%arg0: i32, %arg1: i32) -> (i32, i32) {
    %c0_i32 = arith.constant 0 : i32
    %c0_i32_0 = arith.constant 0 : i32
    %c0_i32_1 = arith.constant 0 : i32
    return %c0_i32, %c0_i32_0 : i32, i32
  }
  func.func @transform_3(%arg0: i32, %arg1: i32) -> (i32, i32, i32) {
    %c0_i32 = arith.constant 0 : i32
    %c0_i32_0 = arith.constant 0 : i32
    %c0_i32_1 = arith.constant 0 : i32
    return %arg0, %c0_i32, %c0_i32_0 : i32, i32, i32
  }
  func.func @transform_4(%arg0: i32, %arg1: i32) -> (i32, i32, i32) {
    %c0_i32 = arith.constant 0 : i32
    %c0_i32_0 = arith.constant 0 : i32
    %c0_i32_1 = arith.constant 0 : i32
    return %arg0, %c0_i32, %c0_i32_0 : i32, i32, i32
  }
}

module attributes {stable_mosaic.version = 11 : i64} {
  func.func @_spectral_loss_kernel(%arg0: i32, %arg1: i32, %arg2: memref<16x128xbf16, #tpu.memory_space<vmem>>, %arg3: memref<16x128xbf16, #tpu.memory_space<vmem>>, %arg4: memref<128x256xbf16, #tpu.memory_space<vmem>>, %arg5: memref<1x8x128xf32, #tpu.memory_space<vmem>>, %arg6: memref<1x16x1xf32, #tpu.memory_space<vmem>>) attributes {dimension_semantics = [#tpu.dimension_semantics<parallel>, #tpu.dimension_semantics<arbitrary>], iteration_bounds = array<i64: 2, 1>, scalar_prefetch = 0 : i64, scratch_operands = 0 : i64, tpu.core_type = #tpu.core_type<tc>, window_params = [{transform_indices = @transform_0, window_bounds = array<i64: 16, 128>}, {transform_indices = @transform_1, window_bounds = array<i64: 16, 128>}, {pipeline_mode = #tpu.pipeline_mode<synchronous>, transform_indices = @transform_2, window_bounds = array<i64: 128, 256>}, {transform_indices = @transform_3, window_bounds = array<i64: 1, 8, 128>}, {transform_indices = @transform_4, window_bounds = array<i64: 1, 16, 1>}]} {
    %c0_i32 = arith.constant 0 : i32
    %0 = arith.cmpi eq, %arg1, %c0_i32 : i32
    %1 = arith.extui %0 : i1 to i32
    %c0_i32_0 = arith.constant 0 : i32
    %2 = arith.cmpi ne, %1, %c0_i32_0 : i32
    scf.if %2 {
      %cst_22 = arith.constant 0.000000e+00 : f32
      %42 = vector.broadcast %cst_22 : f32 to vector<1x8x128xf32>
      %c0_23 = arith.constant 0 : index
      %c0_24 = arith.constant 0 : index
      %c0_25 = arith.constant 0 : index
      %43 = vector.load %arg5[%c0_23, %c0_24, %c0_25] : memref<1x8x128xf32, #tpu.memory_space<vmem>>, vector<1x8x128xf32>
      tpu.vector_store %arg5[%c0_23, %c0_24, %c0_25], %42 {strides = array<i32>} : memref<1x8x128xf32, #tpu.memory_space<vmem>>, vector<1x8x128xf32>,
      %cst_26 = arith.constant 0.000000e+00 : f32
      %44 = vector.broadcast %cst_26 : f32 to vector<1x16x1xf32>
      %c0_27 = arith.constant 0 : index
      %c0_28 = arith.constant 0 : index
      %c0_29 = arith.constant 0 : index
      %45 = vector.load %arg6[%c0_27, %c0_28, %c0_29] : memref<1x16x1xf32, #tpu.memory_space<vmem>>, vector<1x16x1xf32>
      tpu.vector_store %arg6[%c0_27, %c0_28, %c0_29], %44 {strides = array<i32>} : memref<1x16x1xf32, #tpu.memory_space<vmem>>, vector<1x16x1xf32>,
    } else {
    }
    %c0 = arith.constant 0 : index
    %c0_1 = arith.constant 0 : index
    %3 = vector.load %arg2[%c0, %c0_1] : memref<16x128xbf16, #tpu.memory_space<vmem>>, vector<16x128xbf16>
    %c0_2 = arith.constant 0 : index
    %c0_3 = arith.constant 0 : index
    %4 = vector.load %arg3[%c0_2, %c0_3] : memref<16x128xbf16, #tpu.memory_space<vmem>>, vector<16x128xbf16>
    %c0_4 = arith.constant 0 : index
    %c0_5 = arith.constant 0 : index
    %5 = vector.load %arg4[%c0_4, %c0_5] : memref<128x256xbf16, #tpu.memory_space<vmem>>, vector<128x256xbf16>
    %cst = arith.constant dense<0.000000e+00> : vector<16x256xf32>
    %6 = tpu.matmul %3, %5, %cst {dimension_numbers = #tpu.dot_dimension_numbers<[1], [0], [0], [1], [0, 0, 1, 1], [], []>} : vector<16x128xbf16>, vector<128x256xbf16>, vector<16x256xf32> -> vector<16x256xf32>
    %cst_6 = arith.constant dense<0.000000e+00> : vector<16x256xf32>
    %7 = tpu.matmul %4, %5, %cst_6 {dimension_numbers = #tpu.dot_dimension_numbers<[1], [0], [0], [1], [0, 0, 1, 1], [], []>} : vector<16x128xbf16>, vector<128x256xbf16>, vector<16x256xf32> -> vector<16x256xf32>
    %8 = vector.extract_strided_slice %6 {offsets = [0, 0], sizes = [16, 128], strides = [1, 1]} : vector<16x256xf32> to vector<16x128xf32>
    %9 = vector.extract_strided_slice %6 {offsets = [0, 128], sizes = [16, 128], strides = [1, 1]} : vector<16x256xf32> to vector<16x128xf32>
    %10 = vector.extract_strided_slice %7 {offsets = [0, 0], sizes = [16, 128], strides = [1, 1]} : vector<16x256xf32> to vector<16x128xf32>
    %11 = vector.extract_strided_slice %7 {offsets = [0, 128], sizes = [16, 128], strides = [1, 1]} : vector<16x256xf32> to vector<16x128xf32>
    %12 = arith.mulf %8, %8 : vector<16x128xf32>
    %13 = arith.mulf %9, %9 : vector<16x128xf32>
    %14 = arith.addf %12, %13 : vector<16x128xf32>
    %15 = arith.mulf %10, %10 : vector<16x128xf32>
    %16 = arith.mulf %11, %11 : vector<16x128xf32>
    %17 = arith.addf %15, %16 : vector<16x128xf32>
    %18 = arith.subf %17, %14 : vector<16x128xf32>
    %19 = math.absf %18 : vector<16x128xf32>
    %20 = vector.extract_strided_slice %19 {offsets = [0, 0], sizes = [8, 128], strides = [1, 1]} : vector<16x128xf32> to vector<8x128xf32>
    %21 = vector.extract_strided_slice %19 {offsets = [8, 0], sizes = [8, 128], strides = [1, 1]} : vector<16x128xf32> to vector<8x128xf32>
    %22 = arith.addf %20, %21 : vector<8x128xf32>
    %c0_7 = arith.constant 0 : index
    %c0_8 = arith.constant 0 : index
    %c0_9 = arith.constant 0 : index
    %23 = vector.load %arg5[%c0_7, %c0_8, %c0_9] : memref<1x8x128xf32, #tpu.memory_space<vmem>>, vector<1x8x128xf32>
    %24 = vector.shape_cast %22 : vector<8x128xf32> to vector<1x8x128xf32>
    %25 = arith.addf %23, %24 : vector<1x8x128xf32>
    %c0_10 = arith.constant 0 : index
    %c0_11 = arith.constant 0 : index
    %c0_12 = arith.constant 0 : index
    %26 = vector.load %arg5[%c0_10, %c0_11, %c0_12] : memref<1x8x128xf32, #tpu.memory_space<vmem>>, vector<1x8x128xf32>
    tpu.vector_store %arg5[%c0_10, %c0_11, %c0_12], %25 {strides = array<i32>} : memref<1x8x128xf32, #tpu.memory_space<vmem>>, vector<1x8x128xf32>,
    %cst_13 = arith.constant 9.99999993E-9 : f32
    %27 = vector.broadcast %cst_13 : f32 to vector<16x128xf32>
    %28 = arith.addf %17, %27 : vector<16x128xf32>
    %cst_14 = arith.constant 9.99999993E-9 : f32
    %29 = vector.broadcast %cst_14 : f32 to vector<16x128xf32>
    %30 = arith.addf %14, %29 : vector<16x128xf32>
    %31 = tpu.reciprocal %30 : vector<16x128xf32> -> vector<16x128xf32>
    %32 = arith.mulf %28, %31 : vector<16x128xf32>
    %33 = math.log %32 : vector<16x128xf32>
    %34 = arith.mulf %33, %33 : vector<16x128xf32>
    %cst_15 = arith.constant dense<0.000000e+00> : vector<16xf32>
    %35 = vector.multi_reduction <add>, %34, %cst_15 [1] : vector<16x128xf32> to vector<16xf32>
    %36 = vector.shape_cast %35 : vector<16xf32> to vector<16x1xf32>
    %c0_16 = arith.constant 0 : index
    %c0_17 = arith.constant 0 : index
    %c0_18 = arith.constant 0 : index
    %37 = vector.load %arg6[%c0_16, %c0_17, %c0_18] : memref<1x16x1xf32, #tpu.memory_space<vmem>>, vector<1x16x1xf32>
    %38 = math.sqrt %36 : vector<16x1xf32>
    %39 = vector.shape_cast %38 : vector<16x1xf32> to vector<1x16x1xf32>
    %40 = arith.addf %37, %39 : vector<1x16x1xf32>
    %c0_19 = arith.constant 0 : index
    %c0_20 = arith.constant 0 : index
    %c0_21 = arith.constant 0 : index
    %41 = vector.load %arg6[%c0_19, %c0_20, %c0_21] : memref<1x16x1xf32, #tpu.memory_space<vmem>>, vector<1x16x1xf32>
    tpu.vector_store %arg6[%c0_19, %c0_20, %c0_21], %40 {strides = array<i32>} : memref<1x16x1xf32, #tpu.memory_space<vmem>>, vector<1x16x1xf32>,
    return
  }
  func.func @transform_0(%arg0: i32, %arg1: i32) -> (i32, i32) {
    %c1_i32 = arith.constant 1 : i32
    %0 = arith.muli %arg0, %c1_i32 : i32
    %1 = arith.addi %0, %arg1 : i32
    %c0_i32 = arith.constant 0 : i32
    %c0_i32_0 = arith.constant 0 : i32
    return %1, %c0_i32 : i32, i32
  }
  func.func @transform_1(%arg0: i32, %arg1: i32) -> (i32, i32) {
    %c1_i32 = arith.constant 1 : i32
    %0 = arith.muli %arg0, %c1_i32 : i32
    %1 = arith.addi %0, %arg1 : i32
    %c0_i32 = arith.constant 0 : i32
    %c0_i32_0 = arith.constant 0 : i32
    return %1, %c0_i32 : i32, i32
  }
  func.func @transform_2(%arg0: i32, %arg1: i32) -> (i32, i32) {
    %c0_i32 = arith.constant 0 : i32
    %c0_i32_0 = arith.constant 0 : i32
    %c0_i32_1 = arith.constant 0 : i32
    return %c0_i32, %c0_i32_0 : i32, i32
  }
  func.func @transform_3(%arg0: i32, %arg1: i32) -> (i32, i32, i32) {
    %c0_i32 = arith.constant 0 : i32
    %c0_i32_0 = arith.constant 0 : i32
    %c0_i32_1 = arith.constant 0 : i32
    return %arg0, %c0_i32, %c0_i32_0 : i32, i32, i32
  }
  func.func @transform_4(%arg0: i32, %arg1: i32) -> (i32, i32, i32) {
    %c0_i32 = arith.constant 0 : i32
    %c0_i32_0 = arith.constant 0 : i32
    %c0_i32_1 = arith.constant 0 : i32
    return %arg0, %c0_i32, %c0_i32_0 : i32, i32, i32
  }
}

</mosaic_0001>

<bundles_post_ra>
// kernel: loss_fn.2
= control target key start
LH: loop header
LB: loop body
LE: loop exit
PB: predicated region body
PF: predicated region fallthrough
CT: control target
= control target key end

     0   :  { %s834_s15 = smov 0   ;;  %s836_s16 = smov 0   ;;  %s928_s0 = inlined_call_operand.vmem [shape: bf16[64,64], index: 0, kind: input, shape index: {}]   ;;  %s929_s1 = inlined_call_operand.vmem [shape: bf16[64,64], index: 1, kind: input, shape index: {}]   ;;  %s930_s2 = inlined_call_operand.vmem [shape: bf16[64,256], index: 2, kind: input, shape index: {}]   ;;  %s931_s3 = inlined_call_operand.vmem [shape: f32[2,8,128], index: 3, kind: output, shape index: {0}]   ;;  %s932_s4 = inlined_call_operand.vmem [shape: f32[2,32,1], index: 4, kind: output, shape index: {1}]  }
   0x1   :  { %s838_s17 = smov 0  }
   0x2 LB: > { %s27_s18 = sadd.s32 1, %s801_s16  ;;  %p690_p0 = scmp.ge.s32.totalorder %s805_s17, 1  ;;  %s805_s17 = sphi %s838_s17, %s15_s17   ;;  %s801_s16 = sphi %s836_s16, %s934_s16   ;;  %s797_s15 = sphi %s834_s15, %s933_s15  }
   0x3   : > { %p29_p1 = scmp.ge.s32.totalorder %s27_s18, 2  ;;  %p197_p2 = scmp.lt.s32.totalorder %s805_s17, 3 }
   0x5   : > { %s936_s18 = smov (%p29_p1, %s27_s18), 0  ;;  %p198_p3 = pnand %p690_p0, %p197_p2 }
   0x6   : > { %s691_s21 = sshll.u32 (!%p198_p3), %s797_s15, 2  ;;  %p250_p5 = scmp.lt.s32.totalorder (!%p198_p3), %s797_s15, 1 }
   0x7   : > { %201 = sbr.rel (%p198_p3) target bundleno = 436 (0x1b4), region = 32  ;;  %p236_p4 = scmp.lt.s32.totalorder (!%p198_p3), %s691_s21, 7 }
   0xc   : > { %v743_v0 = vld [vmem:[%s930_s2 + $0x34] ss:$8 sps:$4 sm:$0xff]   ;;  %v745_v1 = vld [vmem:[%s930_s2 + $0x30] ss:$8 sps:$4 sm:$0xff]   ;;  %v807_v2 = vmov 0   ;;  %s938_s21 = smov (!%p236_p4, %s691_s21), 7 }
   0xd   : > { %375 = vmatprep.mubr.bf16.mxu0 %v807_v2  ;;  %444 = vmatprep.mubr.bf16.mxu1 %v807_v2  ;;  %v746_v3 = vld [vmem:[%s930_s2 + $0x24] ss:$8 sps:$4 sm:$0xff]   ;;  %v748_v4 = vld [vmem:[%s930_s2 + $0x20] ss:$8 sps:$4 sm:$0xff]   ;;  %v749_v5 = vld [vmem:[%s930_s2 + $0x14] ss:$8 sps:$4 sm:$0xff]  }
   0xe   : > { %351 = vmatprep.subr.bf16.mxu0 %v743_v0  ;;  %420 = vmatprep.subr.bf16.mxu1 %v743_v0  ;;  %s692_s30 = sshll.u32 %s938_s21, 2  ;;  %v751_v6 = vld [vmem:[%s930_s2 + $0x10] ss:$8 sps:$4 sm:$0xff]   ;;  %v752_v7 = vld [vmem:[%s930_s2 + $0x4] ss:$8 sps:$4 sm:$0xff]   ;;  %vm336_vm0 = vcmask 523264  }
   0xf   : > { %352 = vmatpush1.bf16.msra.mxu0 %v745_v1  ;;  %421 = vmatpush1.bf16.msra.mxu1 %v745_v1  ;;  %s239_s7 = scalar_lea.vmem %s928_s0, %s692_s30  ;;  %s247_s12 = scalar_lea.vmem %s929_s1, %s692_s30  ;;  %v754_v8 = vld [vmem:[%s930_s2] ss:$8 sps:$4 sm:$0xff]   ;;  %vm265_vm1 = vcmask 7168   ;;  %v808_v13 = vmov 0.0  }
  0x10   : > { %353 = vmatprep.subr.bf16.mxu0 %v746_v3  ;;  %422 = vmatprep.subr.bf16.mxu1 %v746_v3  ;;  %v755_v9 = vld [vmem:[%s239_s7] sm:$0xff]   ;;  %v757_v11 = vld [vmem:[%s239_s7 + $0x8] sm:$0xff]   ;;  %s940_s15 = smov (!%p250_p5, %s797_s15), 1 }
  0x11   : > { %v756_v10 = vld [vmem:[%s247_s12] sm:$0xff]   ;;  %v758_v12 = vld [vmem:[%s247_s12 + $0x8] sm:$0xff]   ;;  %s716_s21 = sshll.u32 %s940_s15, 5  ;;  %s695_s25 = sshll.u32 %s940_s15, 3 }
  0x12   : > { %s893_s24 = scalar_lea.vmem %s932_s4, %s716_s21  ;;  %s253_s28 = scalar_lea.vmem %s931_s3, %s695_s25 }
  0x13   : > { %354 = vmatpush1.bf16.msra.mxu0 %v748_v4  ;;  %423 = vmatpush1.bf16.msra.mxu1 %v748_v4  ;;  %266 = vst.msk [vmem:[%s893_s24] sm:$0xff] %vm265_vm1, %v808_v13  ;;  %268 = vst.msk [vmem:[%s893_s24 + $0x10] sm:$0xff] %vm265_vm1, %v808_v13 }
  0x14   : > { %355 = vmatprep.subr.bf16.mxu0 %v749_v5  ;;  %424 = vmatprep.subr.bf16.mxu1 %v749_v5  ;;  %267 = vst.msk [vmem:[%s893_s24 + $0x8] sm:$0xff] %vm265_vm1, %v808_v13  ;;  %269 = vst.msk [vmem:[%s893_s24 + $0x18] sm:$0xff] %vm265_vm1, %v808_v13 }
  0x17   : > { %356 = vmatpush1.bf16.msra.mxu0 %v751_v6  ;;  %425 = vmatpush1.bf16.msra.mxu1 %v751_v6 }
  0x18   : > { %357 = vmatprep.subr.bf16.mxu0 %v752_v7  ;;  %426 = vmatprep.subr.bf16.mxu1 %v752_v7 }
  0x1b   : > { %358 = vmatpush1.bf16.msra.mxu0 %v754_v8  ;;  %427 = vmatpush1.bf16.msra.mxu1 %v754_v8 }
  0x1e   : > { %708 = vmatmul.mubr.msk.bf16.vlgmr.msra.gmra.mxu0 %vm336_vm0, %v755_v9  ;;  %712 = vmatmul.mubr.msk.bf16.vlgmr.msra.gmra.mxu1 %vm336_vm0, %v756_v10 }
  0x1f   : > { %385 = vmatprep.mubr.bf16.mxu0 %v807_v2  ;;  %454 = vmatprep.mubr.bf16.mxu1 %v807_v2 }
  0x26   : > { %709 = vmatmul.mubr.msk.bf16.gmra.mxu0 %vm336_vm0, %v757_v11  ;;  %713 = vmatmul.mubr.msk.bf16.gmra.mxu1 %vm336_vm0, %v758_v12 }
  0xde   : > { %v377_v14 = vpop.f32.mrf.mxu0  ;;  %v446_v15 = vpop.f32.mrf.mxu1 }
  0xdf   : > { %v465_v18 = vmul.f32 %v377_v14, %v377_v14  ;;  %v477_v23 = vmul.f32 %v446_v15, %v446_v15 }
  0xe0   : > { %v379_v16 = vpop.f32.mrf.mxu0  ;;  %v448_v17 = vpop.f32.mrf.mxu1 }
  0xe1   : > { %v469_v19 = vmul.f32 %v379_v16, %v379_v16  ;;  %v481_v24 = vmul.f32 %v448_v17, %v448_v17 }
  0xe2   : > { %v381_v20 = vpop.f32.mrf.mxu0  ;;  %v450_v21 = vpop.f32.mrf.mxu1 }
  0xe3   : > { %v473_v22 = vadd.f32 %v469_v19, %v465_v18  ;;  %v478_v25 = vmul.f32 %v450_v21, %v450_v21  ;;  %v466_v29 = vmul.f32 %v381_v20, %v381_v20  ;;  %v485_v35 = vadd.f32 %v481_v24, %v477_v23 }
  0xe4   : > { %v383_v26 = vpop.f32.mrf.mxu0  ;;  %v452_v27 = vpop.f32.mrf.mxu1 }
  0xe5   : > { %v507_v28 = vadd.f32 1e-08, %v473_v22  ;;  %v470_v30 = vmul.f32 %v383_v26, %v383_v26  ;;  %v482_v31 = vmul.f32 %v452_v27, %v452_v27  ;;  %v489_v49 = vsub.f32 %v485_v35, %v473_v22 }
  0xe6   : > { %v387_v32 = vpop.f32.mrf.mxu0  ;;  %v456_v33 = vpop.f32.mrf.mxu1  ;;  %v503_v2 = vadd.f32 1e-08, %v485_v35  ;;  %v539_v35 = vld [vmem:[%s893_s24] sm:$0xff] }
  0xe7   : > { %759 = vrcp.f32 %v507_v28  ;;  %v474_v34 = vadd.f32 %v470_v30, %v466_v29  ;;  %v486_v36 = vadd.f32 %v482_v31, %v478_v25  ;;  %v479_v37 = vmul.f32 %v456_v33, %v456_v33 }
  0xe8   : > { %v389_v38 = vpop.f32.mrf.mxu0  ;;  %v458_v39 = vpop.f32.mrf.mxu1  ;;  %v467_v41 = vmul.f32 %v387_v32, %v387_v32  ;;  %v493_v60 = vand.u32 2147483647, %v489_v49  ;;  %v541_v49 = vld [vmem:[%s893_s24 + $0x10] sm:$0xff] }
  0xe9   : > { %v508_v40 = vadd.f32 1e-08, %v474_v34  ;;  %v471_v42 = vmul.f32 %v389_v38, %v389_v38  ;;  %v483_v43 = vmul.f32 %v458_v39, %v458_v39  ;;  %v490_v44 = vsub.f32 %v486_v36, %v474_v34 }
  0xea   : > { %v391_v45 = vpop.f32.mrf.mxu0  ;;  %v460_v46 = vpop.f32.mrf.mxu1  ;;  %v504_v8 = vadd.f32 1e-08, %v486_v36 }
  0xeb   : > { %761 = vrcp.f32 %v508_v40  ;;  %v475_v47 = vadd.f32 %v471_v42, %v467_v41  ;;  %v487_v48 = vadd.f32 %v483_v43, %v479_v37  ;;  %v480_v50 = vmul.f32 %v460_v46, %v460_v46  ;;  %v540_v42 = vld [vmem:[%s893_s24 + $0x8] sm:$0xff] }
  0xec   : > { %v393_v51 = vpop.f32.mrf.mxu0  ;;  %v462_v52 = vpop.f32.mrf.mxu1  ;;  %v468_v55 = vmul.f32 %v391_v45, %v391_v45  ;;  %v494_v57 = vand.u32 2147483647, %v490_v44 }
  0xed   : > { %v509_v53 = vadd.f32 1e-08, %v475_v47  ;;  %v491_v54 = vsub.f32 %v487_v48, %v475_v47  ;;  %v472_v56 = vmul.f32 %v393_v51, %v393_v51  ;;  %v484_v58 = vmul.f32 %v462_v52, %v462_v52 }
  0xee   : > { %v497_v0 = vadd.f32 %v494_v57, %v493_v60  ;;  %v505_v11 = vadd.f32 1e-08, %v487_v48 }
  0xef   : > { %763 = vrcp.f32 %v509_v53  ;;  %v476_v59 = vadd.f32 %v472_v56, %v468_v55  ;;  %v495_v61 = vand.u32 2147483647, %v491_v54  ;;  %v488_v62 = vadd.f32 %v484_v58, %v480_v50  ;;  %v542_v56 = vld [vmem:[%s893_s24 + $0x18] sm:$0xff] }
  0xf1   : > { %v510_v63 = vadd.f32 1e-08, %v476_v59  ;;  %v492_v1 = vsub.f32 %v488_v62, %v476_v59  ;;  %v498_v4 = vadd.f32 %v497_v0, %v495_v61  ;;  %v506_v14 = vadd.f32 1e-08, %v488_v62 }
  0xf3   : > { %765 = vrcp.f32 %v510_v63  ;;  %v496_v5 = vand.u32 2147483647, %v492_v1 }
  0xf4   : > { %v760_v3 = vpop.eup %759 }
  0xf5   : > { %v515_v6 = vmul.f32 %v760_v3, %v503_v2  ;;  %v499_v7 = vadd.f32 %v498_v4, %v496_v5 }
  0xf7   : > { %767 = vlog2.f32 %v515_v6  ;;  %502 = vst [vmem:[%s253_s28] sm:$0xff] %v499_v7 }
  0xf8   : > { %v762_v9 = vpop.eup %761 }
  0xf9   : > { %v516_v10 = vmul.f32 %v762_v9, %v504_v8 }
  0xfb   : > { %769 = vlog2.f32 %v516_v10 }
  0xfc   : > { %v764_v12 = vpop.eup %763 }
  0xfd   : > { %v517_v13 = vmul.f32 %v764_v12, %v505_v11 }
  0xff   : > { %771 = vlog2.f32 %v517_v13 }
 0x100   : > { %v766_v15 = vpop.eup %765 }
 0x101   : > { %v518_v16 = vmul.f32 %v766_v15, %v506_v14 }
 0x103   : > { %773 = vlog2.f32 %v518_v16 }
 0x104   : > { %v768_v17 = vpop.eup %767 }
 0x105   : > { %v520_v18 = vmul.f32 0.6931472, %v768_v17 }
 0x107   : > { %v527_v19 = vmul.f32 %v520_v18, %v520_v18 }
 0x108   : > { %v770_v20 = vpop.eup %769 }
 0x109   : > { %531 = vadd.xlane.f32.xlu0 %v527_v19  ;;  %v522_v21 = vmul.f32 0.6931472, %v770_v20 }
 0x10b   : > { %v528_v22 = vmul.f32 %v522_v21, %v522_v21 }
 0x10c   : > { %v772_v23 = vpop.eup %771 }
 0x10d   : > { %533 = vadd.xlane.f32.xlu0 %v528_v22  ;;  %v524_v24 = vmul.f32 0.6931472, %v772_v23 }
 0x10f   : > { %v529_v25 = vmul.f32 %v524_v24, %v524_v24 }
 0x110   : > { %v774_v26 = vpop.eup %773 }
 0x111   : > { %535 = vadd.xlane.f32.xlu1 %v529_v25  ;;  %v526_v27 = vmul.f32 0.6931472, %v774_v26 }
 0x113   : > { %v530_v28 = vmul.f32 %v526_v27, %v526_v27 }
 0x115   : > { %537 = vadd.xlane.f32.xlu1 %v530_v28 }
 0x192   : > { %v532_v29 = vpop.xlane.xlu0 %531 }
 0x193   : > { %775 = vrsqrt.f32 %v532_v29  ;;  %vm545_vm2 = vcmp.eq.f32.partialorder %v532_v29, inf  ;;  %v548_v36 = vand.u32 2147483648, %v532_v29  ;;  %vm547_vm3 = vcmp.eq.f32.partialorder %v532_v29, 0.0 }
 0x196   : > { %v534_v30 = vpop.xlane.xlu0 %533 }
 0x197   : > { %777 = vrsqrt.f32 %v534_v30  ;;  %vm552_vm4 = vcmp.eq.f32.partialorder %v534_v30, inf  ;;  %v555_v43 = vand.u32 2147483648, %v534_v30  ;;  %vm554_vm5 = vcmp.eq.f32.partialorder %v534_v30, 0.0 }
 0x19a   : > { %v536_v31 = vpop.xlane.xlu1 %535 }
 0x19b   : > { %779 = vrsqrt.f32 %v536_v31  ;;  %vm559_vm6 = vcmp.eq.f32.partialorder %v536_v31, inf  ;;  %v562_v50 = vand.u32 2147483648, %v536_v31  ;;  %vm561_vm7 = vcmp.eq.f32.partialorder %v536_v31, 0.0 }
 0x19e   : > { %v538_v32 = vpop.xlane.xlu1 %537 }
 0x19f   : > { %781 = vrsqrt.f32 %v538_v32  ;;  %vm566_vm8 = vcmp.eq.f32.partialorder %v538_v32, inf  ;;  %v569_v57 = vand.u32 2147483648, %v538_v32  ;;  %vm568_vm9 = vcmp.eq.f32.partialorder %v538_v32, 0.0 }
 0x1a0   : > { %v776_v33 = vpop.eup %775 }
 0x1a1   : > { %v544_v34 = vmul.f32 %v776_v33, %v532_v29 }
 0x1a3   : > { %v546_v37 = vsel %vm545_vm2, %v532_v29, %v544_v34 }
 0x1a4   : > { %v778_v38 = vpop.eup %777  ;;  %v549_v39 = vsel %vm547_vm3, %v548_v36, %v546_v37 }
 0x1a5   : > { %v571_v40 = vadd.f32 %v549_v39, %v539_v35  ;;  %v551_v41 = vmul.f32 %v778_v38, %v534_v30 }
 0x1a7   : > { %576 = vst.msk [vmem:[%s893_s24] sm:$0xff] %vm265_vm1, %v571_v40  ;;  %v553_v44 = vsel %vm552_vm4, %v534_v30, %v551_v41 }
 0x1a8   : > { %v780_v45 = vpop.eup %779  ;;  %v556_v46 = vsel %vm554_vm5, %v555_v43, %v553_v44 }
 0x1a9   : > { %v572_v47 = vadd.f32 %v556_v46, %v540_v42  ;;  %v558_v48 = vmul.f32 %v780_v45, %v536_v31 }
 0x1ab   : > { %577 = vst.msk [vmem:[%s893_s24 + $0x8] sm:$0xff] %vm265_vm1, %v572_v47  ;;  %v560_v51 = vsel %vm559_vm6, %v536_v31, %v558_v48 }
 0x1ac   : > { %v782_v52 = vpop.eup %781  ;;  %v563_v53 = vsel %vm561_vm7, %v562_v50, %v560_v51 }
 0x1ad   : > { %v573_v54 = vadd.f32 %v563_v53, %v541_v49  ;;  %v565_v55 = vmul.f32 %v782_v52, %v538_v32 }
 0x1af   : > { %578 = vst.msk [vmem:[%s893_s24 + $0x10] sm:$0xff] %vm265_vm1, %v573_v54  ;;  %v567_v58 = vsel %vm566_vm8, %v538_v32, %v565_v55 }
 0x1b0   : > { %v570_v59 = vsel %vm568_vm9, %v569_v57, %v567_v58 }
 0x1b1   : > { %v574_v60 = vadd.f32 %v570_v59, %v542_v56 }
 0x1b3   : > { %579 = vst.msk [vmem:[%s893_s24 + $0x18] sm:$0xff] %vm265_vm1, %v574_v60 }
 0x1b4 PF: > { %s15_s17 = sadd.s32 1, %s805_s17   ;;  %s933_s15 = smov %s801_s16 }
 0x1b5   : > { %p12_p6 = scmp.ge.s32.totalorder %s15_s17, 4   ;;  %s934_s16 = smov %s936_s18 }
 0x1b7   :  { %14 = sbr.rel (!%p12_p6) target bundleno = 2 (0x2), region = 81 }

// kernel: loss_fn.3
= control target key start
LH: loop header
LB: loop body
LE: loop exit
PB: predicated region body
PF: predicated region fallthrough
CT: control target
= control target key end

     0   :  { %s779_s15 = smov 0   ;;  %s781_s16 = smov 0   ;;  %s893_s0 = inlined_call_operand.vmem [shape: bf16[32,128], index: 0, kind: input, shape index: {}]   ;;  %s894_s1 = inlined_call_operand.vmem [shape: bf16[32,128], index: 1, kind: input, shape index: {}]   ;;  %s895_s2 = inlined_call_operand.vmem [shape: bf16[128,256], index: 2, kind: input, shape index: {}]   ;;  %s896_s3 = inlined_call_operand.vmem [shape: f32[2,8,128], index: 3, kind: output, shape index: {0}]   ;;  %s897_s4 = inlined_call_operand.vmem [shape: f32[2,16,1], index: 4, kind: output, shape index: {1}]  }
   0x1   :  { %s783_s17 = smov 0  }
   0x2 LB: > { %s27_s18 = sadd.s32 1, %s746_s16  ;;  %p635_p0 = scmp.ge.s32.totalorder %s750_s17, 1  ;;  %s750_s17 = sphi %s783_s17, %s15_s17   ;;  %s746_s16 = sphi %s781_s16, %s899_s16   ;;  %s742_s15 = sphi %s779_s15, %s898_s15  }
   0x3   : > { %p29_p1 = scmp.ge.s32.totalorder %s27_s18, 2  ;;  %p197_p2 = scmp.lt.s32.totalorder %s750_s17, 3 }
   0x5   : > { %s901_s18 = smov (%p29_p1, %s27_s18), 0  ;;  %p198_p3 = pnand %p635_p0, %p197_p2 }
   0x6   : > { %s636_s21 = sshll.u32 (!%p198_p3), %s742_s15, 1  ;;  %p250_p5 = scmp.lt.s32.totalorder (!%p198_p3), %s742_s15, 1 }
   0x7   : > { %201 = sbr.rel (%p198_p3) target bundleno = 444 (0x1bc), region = 32  ;;  %p236_p4 = scmp.lt.s32.totalorder (!%p198_p3), %s636_s21, 3 }
   0xc   : > { %v690_v0 = vld [vmem:[%s895_s2 + $0x74] ss:$8 sps:$4 sm:$0xff]   ;;  %v692_v1 = vld [vmem:[%s895_s2 + $0x70] ss:$8 sps:$4 sm:$0xff]   ;;  %v752_v2 = vmov 0   ;;  %s903_s21 = smov (!%p236_p4, %s636_s21), 3 }
   0xd   : > { %406 = vmatprep.mubr.bf16.mxu0 %v752_v2  ;;  %455 = vmatprep.mubr.bf16.mxu1 %v752_v2  ;;  %v693_v3 = vld [vmem:[%s895_s2 + $0x64] ss:$8 sps:$4 sm:$0xff]   ;;  %v695_v4 = vld [vmem:[%s895_s2 + $0x60] ss:$8 sps:$4 sm:$0xff]   ;;  %v696_v5 = vld [vmem:[%s895_s2 + $0x54] ss:$8 sps:$4 sm:$0xff]  }
   0xe   : > { %374 = vmatprep.subr.bf16.mxu0 %v690_v0  ;;  %423 = vmatprep.subr.bf16.mxu1 %v690_v0  ;;  %s637_s30 = sshll.u32 %s903_s21, 2  ;;  %v698_v6 = vld [vmem:[%s895_s2 + $0x50] ss:$8 sps:$4 sm:$0xff]   ;;  %v699_v7 = vld [vmem:[%s895_s2 + $0x44] ss:$8 sps:$4 sm:$0xff]   ;;  %s905_s15 = smov (!%p250_p5, %s742_s15), 1 }
   0xf   : > { %375 = vmatpush1.bf16.msra.mxu0 %v692_v1  ;;  %424 = vmatpush1.bf16.msra.mxu1 %v692_v1  ;;  %s824_s11 = scalar_lea.vmem %s893_s0, %s637_s30  ;;  %s829_s14 = scalar_lea.vmem %s894_s1, %s637_s30  ;;  %v701_v8 = vld [vmem:[%s895_s2 + $0x40] ss:$8 sps:$4 sm:$0xff]   ;;  %v702_v9 = vld [vmem:[%s895_s2 + $0x34] ss:$8 sps:$4 sm:$0xff]   ;;  %v704_v10 = vld [vmem:[%s895_s2 + $0x30] ss:$8 sps:$4 sm:$0xff]  }
  0x10   : > { %376 = vmatprep.subr.bf16.mxu0 %v693_v3  ;;  %425 = vmatprep.subr.bf16.mxu1 %v693_v3  ;;  %v705_v11 = vld [vmem:[%s895_s2 + $0x24] ss:$8 sps:$4 sm:$0xff]   ;;  %v707_v12 = vld [vmem:[%s895_s2 + $0x20] ss:$8 sps:$4 sm:$0xff]   ;;  %v708_v13 = vld [vmem:[%s895_s2 + $0x14] ss:$8 sps:$4 sm:$0xff]  }
  0x11   : > { %v710_v14 = vld [vmem:[%s895_s2 + $0x10] ss:$8 sps:$4 sm:$0xff]   ;;  %v711_v15 = vld [vmem:[%s895_s2 + $0x4] ss:$8 sps:$4 sm:$0xff]   ;;  %v713_v16 = vld [vmem:[%s895_s2] ss:$8 sps:$4 sm:$0xff]  }
  0x12   : > { %v714_v17 = vld [vmem:[%s824_s11] sm:$0xff]   ;;  %vm265_vm0 = vcmask 7168   ;;  %s663_s12 = sshll.u32 %s905_s15, 4  ;;  %v753_v19 = vmov 0.0   ;;  %s640_s11 = sshll.u32 %s905_s15, 3 }
  0x13   : > { %377 = vmatpush1.bf16.msra.mxu0 %v695_v4  ;;  %426 = vmatpush1.bf16.msra.mxu1 %v695_v4  ;;  %v715_v18 = vld [vmem:[%s829_s14] sm:$0xff]   ;;  %s868_s20 = scalar_lea.vmem %s897_s4, %s663_s12  ;;  %s253_s22 = scalar_lea.vmem %s896_s3, %s640_s11 }
  0x14   : > { %378 = vmatprep.subr.bf16.mxu0 %v696_v5  ;;  %427 = vmatprep.subr.bf16.mxu1 %v696_v5  ;;  %266 = vst.msk [vmem:[%s868_s20] sm:$0xff] %vm265_vm0, %v753_v19  ;;  %267 = vst.msk [vmem:[%s868_s20 + $0x8] sm:$0xff] %vm265_vm0, %v753_v19 }
  0x17   : > { %379 = vmatpush1.bf16.msra.mxu0 %v698_v6  ;;  %428 = vmatpush1.bf16.msra.mxu1 %v698_v6 }
  0x18   : > { %380 = vmatprep.subr.bf16.mxu0 %v699_v7  ;;  %429 = vmatprep.subr.bf16.mxu1 %v699_v7 }
  0x1b   : > { %381 = vmatpush1.bf16.msra.mxu0 %v701_v8  ;;  %430 = vmatpush1.bf16.msra.mxu1 %v701_v8  ;;  %v504_v63 = vld [vmem:[%s868_s20] sm:$0xff]  ;;  %v505_v6 = vld [vmem:[%s868_s20 + $0x8] sm:$0xff] }
  0x1c   : > { %382 = vmatprep.subr.bf16.mxu0 %v702_v9  ;;  %431 = vmatprep.subr.bf16.mxu1 %v702_v9 }
  0x1f   : > { %383 = vmatpush1.bf16.msra.mxu0 %v704_v10  ;;  %432 = vmatpush1.bf16.msra.mxu1 %v704_v10 }
  0x20   : > { %384 = vmatprep.subr.bf16.mxu0 %v705_v11  ;;  %433 = vmatprep.subr.bf16.mxu1 %v705_v11 }
  0x23   : > { %385 = vmatpush1.bf16.msra.mxu0 %v707_v12  ;;  %434 = vmatpush1.bf16.msra.mxu1 %v707_v12 }
  0x24   : > { %386 = vmatprep.subr.bf16.mxu0 %v708_v13  ;;  %435 = vmatprep.subr.bf16.mxu1 %v708_v13 }
  0x27   : > { %387 = vmatpush1.bf16.msra.mxu0 %v710_v14  ;;  %436 = vmatpush1.bf16.msra.mxu1 %v710_v14 }
  0x28   : > { %388 = vmatprep.subr.bf16.mxu0 %v711_v15  ;;  %437 = vmatprep.subr.bf16.mxu1 %v711_v15 }
  0x2b   : > { %389 = vmatpush1.bf16.msra.mxu0 %v713_v16  ;;  %438 = vmatpush1.bf16.msra.mxu1 %v713_v16 }
  0x2e   : > { %407 = vmatmul.mubr.bf16.vlgmr.msra.gmra.mxu0 %v714_v17  ;;  %456 = vmatmul.mubr.bf16.vlgmr.msra.gmra.mxu1 %v715_v18 }
  0xee   : > { %v408_v20 = vpop.f32.mrf.mxu0  ;;  %v457_v21 = vpop.f32.mrf.mxu1 }
  0xef   : > { %v472_v22 = vmul.f32 %v457_v21, %v457_v21  ;;  %v466_v25 = vmul.f32 %v408_v20, %v408_v20 }
  0xf0   : > { %v410_v23 = vpop.f32.mrf.mxu0  ;;  %v459_v24 = vpop.f32.mrf.mxu1 }
  0xf1   : > { %v468_v26 = vmul.f32 %v410_v23, %v410_v23  ;;  %v474_v27 = vmul.f32 %v459_v24, %v459_v24 }
  0xf2   : > { %v412_v28 = vpop.f32.mrf.mxu0  ;;  %v461_v29 = vpop.f32.mrf.mxu1 }
  0xf3   : > { %v470_v30 = vadd.f32 %v468_v26, %v466_v25  ;;  %v476_v31 = vadd.f32 %v474_v27, %v472_v22  ;;  %v473_v32 = vmul.f32 %v461_v29, %v461_v29  ;;  %v467_v36 = vmul.f32 %v412_v28, %v412_v28 }
  0xf4   : > { %v414_v33 = vpop.f32.mrf.mxu0  ;;  %v463_v34 = vpop.f32.mrf.mxu1 }
  0xf5   : > { %v488_v35 = vadd.f32 1e-08, %v470_v30  ;;  %v469_v37 = vmul.f32 %v414_v33, %v414_v33  ;;  %v475_v38 = vmul.f32 %v463_v34, %v463_v34  ;;  %v478_v40 = vsub.f32 %v476_v31, %v470_v30 }
  0xf6   : > { %v486_v47 = vadd.f32 1e-08, %v476_v31 }
  0xf7   : > { %716 = vrcp.f32 %v488_v35  ;;  %v471_v39 = vadd.f32 %v469_v37, %v467_v36  ;;  %v477_v41 = vadd.f32 %v475_v38, %v473_v32  ;;  %v480_v44 = vand.u32 2147483647, %v478_v40 }
  0xf9   : > { %v489_v42 = vadd.f32 1e-08, %v471_v39  ;;  %v479_v43 = vsub.f32 %v477_v41, %v471_v39  ;;  %v487_v50 = vadd.f32 1e-08, %v477_v41 }
  0xfb   : > { %718 = vrcp.f32 %v489_v42  ;;  %v481_v45 = vand.u32 2147483647, %v479_v43 }
  0xfd   : > { %v482_v46 = vadd.f32 %v481_v45, %v480_v44 }
  0xff   : > { %485 = vst [vmem:[%s253_s22] sm:$0xff] %v482_v46 }
 0x104   : > { %v717_v48 = vpop.eup %716 }
 0x105   : > { %v492_v49 = vmul.f32 %v717_v48, %v486_v47 }
 0x107   : > { %720 = vlog2.f32 %v492_v49 }
 0x108   : > { %v719_v51 = vpop.eup %718 }
 0x109   : > { %v493_v52 = vmul.f32 %v719_v51, %v487_v50 }
 0x10b   : > { %722 = vlog2.f32 %v493_v52 }
 0x114   : > { %v721_v53 = vpop.eup %720 }
 0x115   : > { %v495_v54 = vmul.f32 0.6931472, %v721_v53 }
 0x117   : > { %v498_v55 = vmul.f32 %v495_v54, %v495_v54 }
 0x118   : > { %v723_v56 = vpop.eup %722 }
 0x119   : > { %500 = vadd.xlane.f32.xlu0 %v498_v55  ;;  %v497_v57 = vmul.f32 0.6931472, %v723_v56 }
 0x11b   : > { %v499_v58 = vmul.f32 %v497_v57, %v497_v57 }
 0x11d   : > { %502 = vadd.xlane.f32.xlu0 %v499_v58 }
 0x1a2   : > { %v501_v59 = vpop.xlane.xlu0 %500 }
 0x1a3   : > { %724 = vrsqrt.f32 %v501_v59  ;;  %vm508_vm1 = vcmp.eq.f32.partialorder %v501_v59, inf  ;;  %v511_v0 = vand.u32 2147483648, %v501_v59  ;;  %vm510_vm2 = vcmp.eq.f32.partialorder %v501_v59, 0.0 }
 0x1a6   : > { %v503_v60 = vpop.xlane.xlu0 %502 }
 0x1a7   : > { %726 = vrsqrt.f32 %v503_v60  ;;  %vm515_vm3 = vcmp.eq.f32.partialorder %v503_v60, inf  ;;  %v518_v7 = vand.u32 2147483648, %v503_v60  ;;  %vm517_vm4 = vcmp.eq.f32.partialorder %v503_v60, 0.0 }
 0x1b0   : > { %v725_v61 = vpop.eup %724 }
 0x1b1   : > { %v507_v62 = vmul.f32 %v725_v61, %v501_v59 }
 0x1b3   : > { %v509_v1 = vsel %vm508_vm1, %v501_v59, %v507_v62 }
 0x1b4   : > { %v727_v2 = vpop.eup %726  ;;  %v512_v3 = vsel %vm510_vm2, %v511_v0, %v509_v1 }
 0x1b5   : > { %v520_v4 = vadd.f32 %v512_v3, %v504_v63  ;;  %v514_v5 = vmul.f32 %v727_v2, %v503_v60 }
 0x1b7   : > { %523 = vst.msk [vmem:[%s868_s20] sm:$0xff] %vm265_vm0, %v520_v4  ;;  %v516_v8 = vsel %vm515_vm3, %v503_v60, %v514_v5 }
 0x1b8   : > { %v519_v9 = vsel %vm517_vm4, %v518_v7, %v516_v8 }
 0x1b9   : > { %v521_v10 = vadd.f32 %v519_v9, %v505_v6 }
 0x1bb   : > { %524 = vst.msk [vmem:[%s868_s20 + $0x8] sm:$0xff] %vm265_vm0, %v521_v10 }
 0x1bc PF: > { %s15_s17 = sadd.s32 1, %s750_s17   ;;  %s898_s15 = smov %s746_s16 }
 0x1bd   : > { %p12_p6 = scmp.ge.s32.totalorder %s15_s17, 4   ;;  %s899_s16 = smov %s901_s18 }
 0x1bf   :  { %14 = sbr.rel (!%p12_p6) target bundleno = 2 (0x2), region = 81 }

</bundles_post_ra>
